<compile_context>
chip_gen: v7x
topology: tpu7x:2x2x1
jax: 0.10.0
libtpu: 0.0.40
codegen_flags: <defaults>
</compile_context>

<pallas_src>
import functools

import jax
import jax.numpy as jnp
from jax.experimental import pallas as pl
from jax.experimental.pallas import tpu as pltpu

IN_DIM = 24
HID = 32
LATENT = 16


def _ae_kernel(x_ref,
               w1t_ref, b1_ref,
               w23t_ref, b23_ref,
               w4t_ref, b4_ref,
               o_ref):
    """Batch-major autoencoder forward for one batch tile (all in VMEM).

    x_ref   : (tile, 24) f32 activations, native [B, 24] layout
    w1t_ref : (24, 32)   f32  (= W1^T)
    w23t_ref: (32, 32)   f32  (= (W3 @ W2)^T, folded no-activation pair)
    w4t_ref : (32, 24)   f32  (= W4^T)
    bN_ref  : (1, out)   f32 biases (broadcast over the batch rows)
    o_ref   : (tile, 24) reconstruction
    """
    x = x_ref[...]                                                   # (T, 24)

    # encoder Linear(24->32) + ReLU
    h1 = jnp.dot(x, w1t_ref[...], preferred_element_type=jnp.float32)
    h1 = jnp.maximum(h1 + b1_ref[...], 0.0)                          # (T, 32)

    # folded encoder Linear(32->16) . decoder Linear(16->32), then ReLU
    h2 = jnp.dot(h1, w23t_ref[...], preferred_element_type=jnp.float32)
    h2 = jnp.maximum(h2 + b23_ref[...], 0.0)                         # (T, 32)

    # decoder Linear(32->24)
    y = jnp.dot(h2, w4t_ref[...], preferred_element_type=jnp.float32)
    o_ref[...] = (y + b4_ref[...]).astype(o_ref.dtype)               # (T, 24)


def _round_up(n, m):
    return ((n + m - 1) // m) * m


@functools.partial(jax.jit, static_argnames=("batch_tile", "out_dtype"))
def anomaly_detector_forward(x, params, *, batch_tile=8192, out_dtype=None):
    """x: [B, 24] float32 (PyTorch layout). Returns [B, 24] (out_dtype or x.dtype).

    params: dict with PyTorch-layout weights wN (out, in) and biases bN (out, 1).
    """
    B, F = x.shape
    assert F == IN_DIM
    out_dtype = x.dtype if out_dtype is None else out_dtype

    # --- parameter prep (tiny: a few KiB, negligible vs the HBM-bound kernel) ---
    w1t = params["w1"].T                                    # (24, 32)
    b1 = params["b1"].T                                     # (1, 32)
    w23t = (params["w3"] @ params["w2"]).T                  # (32, 32)
    b23 = (params["w3"] @ params["b2"] + params["b3"]).T    # (1, 32)
    w4t = params["w4"].T                                    # (32, 24)
    b4 = params["b4"].T                                     # (1, 24)

    # --- batch tile selection ---------------------------------------------
    # Multiple of 128 rows, at least 2 grid steps when the batch allows it
    # (so the "parallel" axis can shard across both v7x TensorCores), capped
    # by batch_tile.  If the whole batch fits in one tile, use the full batch
    # (block dim equal to the array dim is always legal).
    tile = min(_round_up(batch_tile, 128), _round_up(pl.cdiv(B, 2), 128))
    if tile >= B:
        tile = B
    grid = (pl.cdiv(B, tile),)

    # VMEM per step (f32, minor dim lane-padded 24->128):
    #   in + out blocks, double-buffered: 4 * tile * 128 * 4 B
    #   f32 intermediates (h1, h2):      ~2 * tile * 128 * 4 B
    # ~24 MiB at tile=8192 -> set an explicit limit (v5e default is only
    # 16 MiB); clamp below v7x's 64 MiB physical VMEM.
    vmem_limit = int(min(56 * 1024 * 1024,
                         max(16 * 1024 * 1024, 1.5 * 6 * tile * 128 * 4)))

    def rep(a):
        # Tiny full-array block, same block index every step -> stays resident.
        return pl.BlockSpec(a.shape, lambda i: (0,) * a.ndim)

    out = pl.pallas_call(
        _ae_kernel,
        out_shape=jax.ShapeDtypeStruct((B, IN_DIM), out_dtype),
        grid_spec=pl.GridSpec(
            grid=grid,
            in_specs=[
                pl.BlockSpec((tile, IN_DIM), lambda i: (i, 0)),
                rep(w1t), rep(b1),
                rep(w23t), rep(b23),
                rep(w4t), rep(b4),
            ],
            out_specs=pl.BlockSpec((tile, IN_DIM), lambda i: (i, 0)),
        ),
        compiler_params=pltpu.CompilerParams(
            # Batch-tile axis is fully independent -> megacore-shard it (v7x).
            dimension_semantics=("parallel",),
            vmem_limit_bytes=vmem_limit,
        ),
    )(x, w1t, b1, w23t, b23, w4t, b4)

    return out


def init_params(key):
    """Deterministic PyTorch-like init. Weights stored (out_features, in_features)."""
    def linear(key, fan_in, fan_out):
        kw, kb = jax.random.split(key)
        bound = 1.0 / jnp.sqrt(fan_in)
        w = jax.random.uniform(kw, (fan_out, fan_in), jnp.float32, -bound, bound)
        b = jax.random.uniform(kb, (fan_out, 1), jnp.float32, -bound, bound)
        return w, b

    k1, k2, k3, k4 = jax.random.split(key, 4)
    w1, b1 = linear(k1, IN_DIM, HID)      # encoder Linear(24, 32)
    w2, b2 = linear(k2, HID, LATENT)      # encoder Linear(32, 16)
    w3, b3 = linear(k3, LATENT, HID)      # decoder Linear(16, 32)
    w4, b4 = linear(k4, HID, IN_DIM)      # decoder Linear(32, 24)
    return dict(w1=w1, b1=b1, w2=w2, b2=b2, w3=w3, b3=b3, w4=w4, b4=b4)


def reference_forward_f32(x, p):
    """Pure-f32 JAX reference matching the PyTorch forward."""
    h = jnp.maximum(x @ p["w1"].T + p["b1"].T, 0.0)
    z = h @ p["w2"].T + p["b2"].T
    h2 = jnp.maximum(z @ p["w3"].T + p["b3"].T, 0.0)
    return h2 @ p["w4"].T + p["b4"].T


if __name__ == "__main__":
    key = jax.random.PRNGKey(0)
    kx1, kx2, kp = jax.random.split(key, 3)
    params = init_params(kp)

    # Small demo batch: a single (full-batch) block.
    x_small = jax.random.normal(kx1, (16, IN_DIM), jnp.float32)
    out_small = jax.block_until_ready(anomaly_detector_forward(x_small, params))
    assert out_small.shape == (16, IN_DIM)
    ref_small = reference_forward_f32(x_small, params)
    assert jnp.allclose(out_small, ref_small, atol=2e-2, rtol=2e-2), \
        "small-batch mismatch vs f32 reference"

    # Multi-step grid with a ragged last block (1000 = 512 + 488) to exercise
    # the cdiv grid / dropped out-of-bounds rows and the parallel axis.
    x_big = jax.random.normal(kx2, (1000, IN_DIM), jnp.float32)
    out_big = jax.block_until_ready(
        anomaly_detector_forward(x_big, params, batch_tile=512))
    assert out_big.shape == (1000, IN_DIM)
    ref_big = reference_forward_f32(x_big, params)
    assert jnp.allclose(out_big, ref_big, atol=2e-2, rtol=2e-2), \
        "large-batch mismatch vs f32 reference"

    print("KERNEL_OK")
</pallas_src>

<mosaic_0001>
module attributes {stable_mosaic.version = 11 : i64} {
  func.func @_ae_kernel(%arg0: i32, %arg1: memref<16x24xf32, #tpu.memory_space<vmem>>, %arg2: memref<24x32xf32, #tpu.memory_space<vmem>>, %arg3: memref<1x32xf32, #tpu.memory_space<vmem>>, %arg4: memref<32x32xf32, #tpu.memory_space<vmem>>, %arg5: memref<1x32xf32, #tpu.memory_space<vmem>>, %arg6: memref<32x24xf32, #tpu.memory_space<vmem>>, %arg7: memref<1x24xf32, #tpu.memory_space<vmem>>, %arg8: memref<16x24xf32, #tpu.memory_space<vmem>>) attributes {dimension_semantics = [#tpu.dimension_semantics<parallel>], iteration_bounds = array<i64: 1>, scalar_prefetch = 0 : i64, scratch_operands = 0 : i64, tpu.core_type = #tpu.core_type<tc>, window_params = [{transform_indices = @transform_0, window_bounds = array<i64: 16, 24>}, {pipeline_mode = #tpu.pipeline_mode<synchronous>, transform_indices = @transform_1, window_bounds = array<i64: 24, 32>}, {pipeline_mode = #tpu.pipeline_mode<synchronous>, transform_indices = @transform_2, window_bounds = array<i64: 1, 32>}, {pipeline_mode = #tpu.pipeline_mode<synchronous>, transform_indices = @transform_3, window_bounds = array<i64: 32, 32>}, {pipeline_mode = #tpu.pipeline_mode<synchronous>, transform_indices = @transform_4, window_bounds = array<i64: 1, 32>}, {pipeline_mode = #tpu.pipeline_mode<synchronous>, transform_indices = @transform_5, window_bounds = array<i64: 32, 24>}, {pipeline_mode = #tpu.pipeline_mode<synchronous>, transform_indices = @transform_6, window_bounds = array<i64: 1, 24>}, {transform_indices = @transform_7, window_bounds = array<i64: 16, 24>}]} {
    %c0 = arith.constant 0 : index
    %c0_0 = arith.constant 0 : index
    %0 = vector.load %arg1[%c0, %c0_0] : memref<16x24xf32, #tpu.memory_space<vmem>>, vector<16x24xf32>
    %c0_1 = arith.constant 0 : index
    %c0_2 = arith.constant 0 : index
    %1 = vector.load %arg2[%c0_1, %c0_2] : memref<24x32xf32, #tpu.memory_space<vmem>>, vector<24x32xf32>
    %cst = arith.constant dense<0.000000e+00> : vector<16x32xf32>
    %2 = tpu.matmul %0, %1, %cst {dimension_numbers = #tpu.dot_dimension_numbers<[1], [0], [0], [1], [0, 0, 1, 1], [], []>} : vector<16x24xf32>, vector<24x32xf32>, vector<16x32xf32> -> vector<16x32xf32>
    %c0_3 = arith.constant 0 : index
    %c0_4 = arith.constant 0 : index
    %3 = vector.load %arg3[%c0_3, %c0_4] : memref<1x32xf32, #tpu.memory_space<vmem>>, vector<1x32xf32>
    %4 = vector.broadcast %3 : vector<1x32xf32> to vector<16x32xf32>
    %5 = arith.addf %2, %4 : vector<16x32xf32>
    %cst_5 = arith.constant 0.000000e+00 : f32
    %6 = vector.broadcast %cst_5 : f32 to vector<16x32xf32>
    %7 = arith.maximumf %5, %6 : vector<16x32xf32>
    %c0_6 = arith.constant 0 : index
    %c0_7 = arith.constant 0 : index
    %8 = vector.load %arg4[%c0_6, %c0_7] : memref<32x32xf32, #tpu.memory_space<vmem>>, vector<32x32xf32>
    %cst_8 = arith.constant dense<0.000000e+00> : vector<16x32xf32>
    %9 = tpu.matmul %7, %8, %cst_8 {dimension_numbers = #tpu.dot_dimension_numbers<[1], [0], [0], [1], [0, 0, 1, 1], [], []>} : vector<16x32xf32>, vector<32x32xf32>, vector<16x32xf32> -> vector<16x32xf32>
    %c0_9 = arith.constant 0 : index
    %c0_10 = arith.constant 0 : index
    %10 = vector.load %arg5[%c0_9, %c0_10] : memref<1x32xf32, #tpu.memory_space<vmem>>, vector<1x32xf32>
    %11 = vector.broadcast %10 : vector<1x32xf32> to vector<16x32xf32>
    %12 = arith.addf %9, %11 : vector<16x32xf32>
    %cst_11 = arith.constant 0.000000e+00 : f32
    %13 = vector.broadcast %cst_11 : f32 to vector<16x32xf32>
    %14 = arith.maximumf %12, %13 : vector<16x32xf32>
    %c0_12 = arith.constant 0 : index
    %c0_13 = arith.constant 0 : index
    %15 = vector.load %arg6[%c0_12, %c0_13] : memref<32x24xf32, #tpu.memory_space<vmem>>, vector<32x24xf32>
    %cst_14 = arith.constant dense<0.000000e+00> : vector<16x24xf32>
    %16 = tpu.matmul %14, %15, %cst_14 {dimension_numbers = #tpu.dot_dimension_numbers<[1], [0], [0], [1], [0, 0, 1, 1], [], []>} : vector<16x32xf32>, vector<32x24xf32>, vector<16x24xf32> -> vector<16x24xf32>
    %c0_15 = arith.constant 0 : index
    %c0_16 = arith.constant 0 : index
    %17 = vector.load %arg7[%c0_15, %c0_16] : memref<1x24xf32, #tpu.memory_space<vmem>>, vector<1x24xf32>
    %18 = vector.broadcast %17 : vector<1x24xf32> to vector<16x24xf32>
    %19 = arith.addf %16, %18 : vector<16x24xf32>
    %c0_17 = arith.constant 0 : index
    %c0_18 = arith.constant 0 : index
    %20 = vector.load %arg8[%c0_17, %c0_18] : memref<16x24xf32, #tpu.memory_space<vmem>>, vector<16x24xf32>
    tpu.vector_store %arg8[%c0_17, %c0_18], %19 {strides = array<i32>} : memref<16x24xf32, #tpu.memory_space<vmem>>, vector<16x24xf32>,
    return
  }
  func.func @transform_0(%arg0: i32) -> (i32, i32) {
    %c0_i32 = arith.constant 0 : i32
    %c0_i32_0 = arith.constant 0 : i32
    return %arg0, %c0_i32 : i32, i32
  }
  func.func @transform_1(%arg0: i32) -> (i32, i32) {
    %c0_i32 = arith.constant 0 : i32
    %c0_i32_0 = arith.constant 0 : i32
    %c0_i32_1 = arith.constant 0 : i32
    return %c0_i32, %c0_i32_0 : i32, i32
  }
  func.func @transform_2(%arg0: i32) -> (i32, i32) {
    %c0_i32 = arith.constant 0 : i32
    %c0_i32_0 = arith.constant 0 : i32
    %c0_i32_1 = arith.constant 0 : i32
    return %c0_i32, %c0_i32_0 : i32, i32
  }
  func.func @transform_3(%arg0: i32) -> (i32, i32) {
    %c0_i32 = arith.constant 0 : i32
    %c0_i32_0 = arith.constant 0 : i32
    %c0_i32_1 = arith.constant 0 : i32
    return %c0_i32, %c0_i32_0 : i32, i32
  }
  func.func @transform_4(%arg0: i32) -> (i32, i32) {
    %c0_i32 = arith.constant 0 : i32
    %c0_i32_0 = arith.constant 0 : i32
    %c0_i32_1 = arith.constant 0 : i32
    return %c0_i32, %c0_i32_0 : i32, i32
  }
  func.func @transform_5(%arg0: i32) -> (i32, i32) {
    %c0_i32 = arith.constant 0 : i32
    %c0_i32_0 = arith.constant 0 : i32
    %c0_i32_1 = arith.constant 0 : i32
    return %c0_i32, %c0_i32_0 : i32, i32
  }
  func.func @transform_6(%arg0: i32) -> (i32, i32) {
    %c0_i32 = arith.constant 0 : i32
    %c0_i32_0 = arith.constant 0 : i32
    %c0_i32_1 = arith.constant 0 : i32
    return %c0_i32, %c0_i32_0 : i32, i32
  }
  func.func @transform_7(%arg0: i32) -> (i32, i32) {
    %c0_i32 = arith.constant 0 : i32
    %c0_i32_0 = arith.constant 0 : i32
    return %arg0, %c0_i32 : i32, i32
  }
}

</mosaic_0001>

<bundles_post_ra>
// kernel: anomaly_detector_forward.1
= control target key start
LH: loop header
LB: loop body
LE: loop exit
PB: predicated region body
PF: predicated region fallthrough
CT: control target
= control target key end

     0   :  { %vm39_vm0 = vcmask 195584   ;;  %s543_s0 = inlined_call_operand.vmem [shape: f32[16,24], index: 0, kind: input, shape index: {}]   ;;  %s544_s1 = inlined_call_operand.vmem [shape: f32[24,32], index: 1, kind: input, shape index: {}]   ;;  %s545_s2 = inlined_call_operand.vmem [shape: f32[1,32], index: 2, kind: input, shape index: {}]   ;;  %s546_s3 = inlined_call_operand.vmem [shape: f32[32,32], index: 3, kind: input, shape index: {}]   ;;  %s547_s4 = inlined_call_operand.vmem [shape: f32[1,32], index: 4, kind: input, shape index: {}]   ;;  %s548_s5 = inlined_call_operand.vmem [shape: f32[32,24], index: 5, kind: input, shape index: {}]   ;;  %s549_s6 = inlined_call_operand.vmem [shape: f32[1,24], index: 6, kind: input, shape index: {}]   ;;  %s550_s7 = inlined_call_operand.hbm [shape: f32[16,24], index: 7, kind: output, shape index: {}]  }
   0x1   :  { %v29_v0 = vld [vmem:[%s544_s1] sm:$0xff]  ;;  %v30_v1 = vld [vmem:[%s544_s1 + $0x8] sm:$0xff]  ;;  %v31_v5 = vld [vmem:[%s544_s1 + $0x10] sm:$0xff] }
   0x2   :  { %v385_v2 = vpack.c.bf16 %v30_v1, %v29_v0  ;;  %v27_v3 = vld [vmem:[%s543_s0] sm:$0xff]  ;;  %v124_v6 = vld [vmem:[%s546_s3 + $0x8] sm:$0xff] }
   0x3   :  { %v123_v4 = vld [vmem:[%s546_s3] sm:$0xff]  ;;  %360 = vmatprep.mubr.msk.f32.mxu0 %vm39_vm0, %v27_v3 }
   0x4   :  { %12 = vsyncpa [#allocation3], 0  ;;  %386 = vmatprep.subr.bf16.mxu0 %v385_v2  ;;  %v389_v7 = vpack.c.bf16 %v124_v6, %v123_v4  ;;  %v28_v8 = vld [vmem:[%s543_s0 + $0x8] sm:$0xff]  ;;  %v125_v9 = vld [vmem:[%s546_s3 + $0x10] sm:$0xff]  ;;  %vm134_vm1 = vcmask 261120  }
   0x5   :  { %388 = vmatpush3.bf16.msra.mxu0 %v385_v2  ;;  %v126_v10 = vld [vmem:[%s546_s3 + $0x18] sm:$0xff]  ;;  %v218_v12 = vld [vmem:[%s548_s5] sm:$0xff]  ;;  %v219_v13 = vld [vmem:[%s548_s5 + $0x8] sm:$0xff] }
   0x6   :  { %358 = vmatprep.subr.mxu0 %v31_v5  ;;  %390 = vmatprep.subr.bf16.mxu1 %v389_v7  ;;  %v393_v11 = vpack.c.bf16 %v126_v10, %v125_v9  ;;  %v397_v14 = vpack.c.bf16 %v219_v13, %v218_v12  ;;  %v328_v15 = vld [vmem:[%s545_s2] ss:$0 sm:$0xff]  ;;  %v220_v22 = vld [vmem:[%s548_s5 + $0x10] sm:$0xff]  ;;  %v221_v23 = vld [vmem:[%s548_s5 + $0x18] sm:$0xff]  ;;  %s432_s5 = smov [#allocation2]  }
   0x7   :  { %392 = vmatpush3.bf16.msra.mxu1 %v389_v7  ;;  %v401_v24 = vpack.c.bf16 %v221_v23, %v220_v22  ;;  %v331_v25 = vld [vmem:[%s547_s4] ss:$0 sm:$0xff]  ;;  %s317_s29 = sshll.u32 %s432_s5, 4  ;;  %s318_s29 = int_to_ptr.vmem [resolvable:$true] %s317_s29 }
   0x8   :  { %394 = vmatprep.subr.bf16.mxu1 %v393_v11  ;;  %v334_v32 = vld [vmem:[%s549_s6] ss:$0 sm:$0xff]  ;;  %s408_s4 = scalar_lea.vmem %s318_s29, 256  ;;  %p413_p1 = scmp.lt.s32.totalorder %s318_s29, %s318_s29 }
   0x9   :  { %359 = vmatpush3.msra.mxu0 %v31_v5  ;;  %p409_p0 = scmp.ne.s32.totalorder %s318_s29, %s408_s4  ;;  %p414_p2 = scmp.lt.s32.totalorder %s408_s4, %s408_s4 }
   0xa   :  { %361 = vmatmul.mubr.msk.f32.vlgmr.msra.gmra.mrb[0].mxu0 %vm39_vm0, %v28_v8  ;;  %398 = vmatprep.subr.bf16.mxu0 %v397_v14 }
   0xb   :  { %396 = vmatpush3.bf16.msra.mxu1 %v393_v11  ;;  %400 = vmatpush3.bf16.msra.mxu0 %v397_v14  ;;  %p415_p3 = por %p414_p2, %p413_p1 }
   0xc   :  { %402 = vmatprep.subr.bf16.mxu0 %v401_v24 }
   0xd   :  { %p416_p4 = pnand %p415_p3, %p409_p0 }
   0xf   :  { %404 = vmatpush3.bf16.msra.mxu0 %v401_v24 }
  0xdd   :  { %v362_v16 = vpop.f32.mrb[0].mxu0 }
  0xde   :  { %v118_v17 = vadd.f32 %v362_v16, %v328_v15  ;;  %v112_v18 = vpop.f32.mrb[1].mxu0 }
  0xdf   :  { %v113_v19 = vadd.f32 %v328_v15, %v112_v18 }
  0xe0   :  { %v122_v21 = vmax.f32 %v118_v17, 0.0 }
  0xe1   :  { %v121_v20 = vmax.f32 %v113_v19, 0.0 }
  0xe3   :  { %371 = vmatprep.mubr.msk.f32.mxu1 %vm134_vm1, %v121_v20 }
  0xe4   :  { %372 = vmatmul.mubr.msk.f32.vlgmr.msra.gmra.mrb[0].mxu1 %vm134_vm1, %v122_v21 }
 0x1b7   :  { %v373_v26 = vpop.f32.mrb[0].mxu1 }
 0x1b8   :  { %v213_v27 = vadd.f32 %v373_v26, %v331_v25  ;;  %v207_v28 = vpop.f32.mrb[1].mxu1 }
 0x1b9   :  { %v208_v29 = vadd.f32 %v331_v25, %v207_v28 }
 0x1ba   :  { %v217_v31 = vmax.f32 %v213_v27, 0.0 }
 0x1bb   :  { %v216_v30 = vmax.f32 %v208_v29, 0.0 }
 0x1bd   :  { %382 = vmatprep.mubr.msk.f32.mxu0 %vm134_vm1, %v216_v30 }
 0x1be   :  { %383 = vmatmul.mubr.msk.f32.vlgmr.msra.gmra.mrb[2].mxu0 %vm134_vm1, %v217_v31 }
 0x291   :  { %v384_v33 = vpop.f32.mrb[2].mxu0 }
 0x292   :  { %v307_v34 = vadd.f32 %v384_v33, %v334_v32  ;;  %v301_v35 = vpop.f32.mrb[3].mxu0 }
 0x293   :  { %v302_v36 = vadd.f32 %v334_v32, %v301_v35 }
 0x294   :  { %311 = vst.msk [vmem:[#allocation2 + $0x8] sm:$0xff] %vm39_vm0, %v307_v34 }
 0x295   :  { %310 = vst.msk [vmem:[#allocation2] sm:$0xff] %vm39_vm0, %v302_v36 }
 0x296   :  { %419 = shalt.err (!%p416_p4)
}
 0x297   :  { %s420_s8 = scalar_lea.hbm %s550_s7, 256 }
 0x298   :  { %p421_p5 = scmp.ne.s32.totalorder %s550_s7, %s420_s8  ;;  %p424_p6 = scmp.lt.u32.totalorder %s420_s8, %s550_s7 }
 0x29a   :  { %p426_p7 = pnand %p424_p6, %p421_p5 }
 0x29c   :  { %429 = shalt.err (!%p426_p7)
}
 0x29d   :  { %s433_s13 = smov 128   ;;  %s434_s14 = smov 8  }
 0x29e   :  { %323 = dma.vmem_to_hbm [thread:$0]  %s318_s29, 256, %s550_s7, [#allocation3], %s433_s13, %s433_s13, %s434_s14  }
 0x29f   :  { %430 = dma.done.wait [#allocation3], 256  }
 0x2a0   :  { %431 = vsyncadd [#allocation3], 4294967040 }
 0x2a1   :  { %327 = vsyncpa [#allocation3], 1 }

</bundles_post_ra>
